<compile_context>
chip_gen: v7x
topology: tpu7x:2x2x1
jax: 0.10.0
libtpu: 0.0.40
codegen_flags: <defaults>
</compile_context>

<pallas_src>
import math

import jax
import jax.numpy as jnp
from jax import lax
from jax.experimental import pallas as pl
from jax.experimental.pallas import tpu as pltpu


_LANE = 128
_MAX_TILE = 32 * 1024            # lanes per grid step (8192-32768 is the sweet spot)


def _vmem_budgets():
    """(block budget for counted buffers, vmem_limit_bytes) per TPU generation."""
    cap = 64 * 1024 * 1024       # conservative default = v7x per-core VMEM
    try:
        info = pltpu.get_tpu_info()
        cap = int(getattr(info, "vmem_capacity_bytes", cap)) or cap
    except Exception:
        pass
    return cap // 4, cap // 2


# ---------------------------------------------------------------------------
# Main dice + focal kernel: grid (P parallel column-halves, tiles over columns)
# ---------------------------------------------------------------------------
def _make_main_kernel(*, gamma, rows, tile, cols, tpp, ragged,
                      with_boundary, binary_targets):

    def kernel(*refs):
        if with_boundary:
            (yp_ref, yt_ref, b_ref,
             inter_out, union_out, focal_out,
             inter_acc, union_acc, focal_acc) = refs
        else:
            (yp_ref, yt_ref,
             inter_out, union_out, focal_out,
             inter_acc, union_acc, focal_acc) = refs
            b_ref = None

        p = pl.program_id(0)
        j = pl.program_id(1)

        @pl.when(j == 0)
        def _init():
            inter_acc[...] = jnp.zeros_like(inter_acc)
            union_acc[...] = jnp.zeros_like(union_acc)
            focal_acc[...] = jnp.zeros_like(focal_acc)

        # Upcast in-kernel (bf16 inputs halve HBM traffic); math in f32.
        logits = yp_ref[...].astype(jnp.float32)
        yt = yt_ref[...].astype(jnp.float32)
        yp = jax.nn.sigmoid(logits)

        inter_c = yp * yt
        union_c = yp + yt

        if binary_targets:
            # Hard 0/1 targets: p_t = y*p + (1-y)*(1-p); 1 log instead of
            # 2 logs + 1 exp per element (EUP relief, identical for binary masks).
            pt = yt * yp + (1.0 - yt) * (1.0 - yp)
            bce = -jnp.maximum(jnp.log(pt), -100.0)
        else:
            # Exact F.binary_cross_entropy(sigmoid(x), y) semantics (soft-label safe).
            log_p = jnp.maximum(jnp.log(yp), -100.0)
            log_1mp = jnp.maximum(jnp.log(1.0 - yp), -100.0)
            bce = -(yt * log_p + (1.0 - yt) * log_1mp)
            pt = jnp.exp(-bce)

        one_minus_pt = 1.0 - pt
        if gamma == 2.0:
            focal_c = one_minus_pt * one_minus_pt * bce
        else:
            focal_c = one_minus_pt ** gamma * bce

        if with_boundary:
            focal_c = focal_c * (b_ref[...].astype(jnp.float32) * 0.1 + 1.0)

        if ragged:
            # Mask the out-of-range columns of the (only) ragged last tile.
            col0 = (p * tpp + j) * tile
            lane = lax.broadcasted_iota(jnp.int32, (rows, tile), 1)
            valid = (lane + col0) < cols
            inter_c = jnp.where(valid, inter_c, 0.0)
            union_c = jnp.where(valid, union_c, 0.0)
            focal_c = jnp.where(valid, focal_c, 0.0)

        # Pure VPU adds, full-width unmasked stores every step.
        inter_acc[...] += inter_c
        union_acc[...] += union_c
        focal_acc[...] += focal_c

        @pl.when(j == pl.num_programs(1) - 1)
        def _finalize():
            def _rows_out(acc):
                s = jnp.sum(acc[...], axis=1, keepdims=True)          # (rows, 1)
                return jnp.broadcast_to(s[None], (1, rows, _LANE))    # lane-dense
            inter_out[...] = _rows_out(inter_acc)
            union_out[...] = _rows_out(union_acc)
            focal_out[...] = _rows_out(focal_acc)

    return kernel


def _main_loss(y_pred, y_true, boundary, *, gamma, smooth, is_boun, binary_targets):
    B = y_pred.shape[0]
    N = math.prod(y_pred.shape[1:])

    # ---- sublane occupancy: fold each image into R rows so rows >= 8 --------
    R = 1
    if B < 8:
        want = 8 // math.gcd(B, 8)           # smallest R making B*R a multiple of 8
        if N % want == 0:
            R = want
        else:
            r = 1
            while r < 8 and N % (r * 2) == 0 and B * r < 8:
                r *= 2
            R = r
    rows = B * R
    cols = N // R

    # Row-major reshapes are free (no HBM copy).
    inputs = [y_pred.reshape(rows, cols), y_true.reshape(rows, cols)]
    if is_boun:
        inputs.append(boundary.reshape(rows, cols))
    n_in = len(inputs)

    # ---- dtype/generation-aware tile size -----------------------------------
    block_budget, vmem_limit = _vmem_budgets()
    in_bytes = sum(2 * x.dtype.itemsize for x in inputs)   # double-buffered inputs
    bytes_per_col = rows * (in_bytes + 3 * 4)              # + 3 f32 accumulators
    tile = block_budget // max(bytes_per_col, 1)
    tile = max(_LANE, min(_MAX_TILE, (tile // _LANE) * _LANE))

    if cols <= tile:
        tile = cols                 # single full-width tile, block == full dims
        n_tiles = 1
    else:
        n_tiles = (cols + tile - 1) // tile
    ragged = (n_tiles > 1) and (cols % tile != 0)

    # ---- optional parallel axis (feeds both v7x TensorCores) ----------------
    P = 2 if (n_tiles >= 2 and n_tiles % 2 == 0) else 1
    tpp = n_tiles // P

    kernel = _make_main_kernel(
        gamma=float(gamma), rows=rows, tile=tile, cols=cols, tpp=tpp,
        ragged=ragged, with_boundary=is_boun, binary_targets=binary_targets)

    in_specs = [pl.BlockSpec((rows, tile), lambda p, j: (0, p * tpp + j))
                for _ in range(n_in)]
    out_shape = tuple(jax.ShapeDtypeStruct((P, rows, _LANE), jnp.float32)
                      for _ in range(3))
    out_specs = [pl.BlockSpec((1, rows, _LANE), lambda p, j: (p, 0, 0))
                 for _ in range(3)]

    inter_p, union_p, focal_p = pl.pallas_call(
        kernel,
        out_shape=out_shape,
        grid_spec=pltpu.PrefetchScalarGridSpec(
            num_scalar_prefetch=0,
            grid=(P, tpp),
            in_specs=in_specs,
            out_specs=out_specs,
            scratch_shapes=[pltpu.VMEM((rows, tile), jnp.float32),
                            pltpu.VMEM((rows, tile), jnp.float32),
                            pltpu.VMEM((rows, tile), jnp.float32)]),
        compiler_params=pltpu.CompilerParams(
            dimension_semantics=("parallel", "arbitrary"),
            vmem_limit_bytes=int(vmem_limit)),
    )(*inputs)

    # ---- tiny JAX epilogue: combine per-parallel-index / per-row partials ----
    inter_rows = inter_p[:, :, 0].sum(axis=0)               # (rows,)
    union_rows = union_p[:, :, 0].sum(axis=0)
    focal_sum = focal_p[:, :, 0].sum()

    inter_img = inter_rows.reshape(B, R).sum(axis=1)         # (B,)
    union_img = union_rows.reshape(B, R).sum(axis=1)
    dice = (2.0 * inter_img + smooth) / (union_img + smooth)
    dice_loss = 1.0 - jnp.mean(dice)
    focal_mean = focal_sum / float(B * N)

    w_dice, w_focal = (0.7, 0.2) if is_boun else (0.5, 0.5)
    return w_dice * dice_loss + w_focal * focal_mean


# ---------------------------------------------------------------------------
# Boundary-align loss: 3x3 distance transform, gridded over B*C planes
# ---------------------------------------------------------------------------
def _make_boundary_kernel(total_elems):
    inv_total = 1.0 / float(total_elems)

    def _min3(a, axis):
        # 3-wide min along `axis`; edge fill 1.0 is neutral for binary maps, so
        # this matches 1 - max_pool2d(1 - x, 3, stride=1, padding=1).
        n = a.shape[axis]
        fill_shape = list(a.shape)
        fill_shape[axis] = 1
        fill = jnp.ones(fill_shape, jnp.float32)
        nxt = jnp.concatenate([lax.slice_in_dim(a, 1, n, axis=axis), fill], axis=axis)
        prv = jnp.concatenate([fill, lax.slice_in_dim(a, 0, n - 1, axis=axis)], axis=axis)
        return jnp.minimum(a, jnp.minimum(nxt, prv))

    def kernel(yp_ref, yt_ref, out_ref, acc_ref):
        g = pl.program_id(0)

        @pl.when(g == 0)
        def _init():
            acc_ref[...] = jnp.zeros_like(acc_ref)

        logits = yp_ref[...].astype(jnp.float32)
        yt = yt_ref[...].astype(jnp.float32)
        pred_bin = (logits > 0.0).astype(jnp.float32)   # sigmoid(x) > 0.5  <=>  x > 0
        gt_bin = (yt > 0.5).astype(jnp.float32)
        pred_dist = _min3(_min3(pred_bin, 2), 1)        # separable 3x3 min-pool
        gt_dist = _min3(_min3(gt_bin, 2), 1)
        s = jnp.sum(jnp.abs(pred_dist - gt_dist))
        acc_ref[...] += jnp.full((1, _LANE), s, jnp.float32)

        @pl.when(g == pl.num_programs(0) - 1)
        def _finalize():
            out_ref[...] = acc_ref[...] * inv_total

    return kernel


def _boundary_align_loss(y_pred, y_true):
    B, C, H, W = y_pred.shape
    _, vmem_limit = _vmem_budgets()
    yp3 = y_pred.reshape(B * C, H, W)
    yt3 = y_true.reshape(B * C, H, W)
    out = pl.pallas_call(
        _make_boundary_kernel(B * C * H * W),
        out_shape=jax.ShapeDtypeStruct((1, _LANE), jnp.float32),
        grid_spec=pltpu.PrefetchScalarGridSpec(
            num_scalar_prefetch=0,
            grid=(B * C,),
            in_specs=[pl.BlockSpec((1, H, W), lambda g: (g, 0, 0)),
                      pl.BlockSpec((1, H, W), lambda g: (g, 0, 0))],
            out_specs=pl.BlockSpec((1, _LANE), lambda g: (0, 0)),
            scratch_shapes=[pltpu.VMEM((1, _LANE), jnp.float32)]),
        compiler_params=pltpu.CompilerParams(
            dimension_semantics=("arbitrary",),
            vmem_limit_bytes=int(vmem_limit)),
    )(yp3, yt3)
    return out[0, 0]


# ---------------------------------------------------------------------------
# Public wrapper (matches SegmentationLoss.forward)
# ---------------------------------------------------------------------------
def segmentation_loss(y_pred, y_true, boundary=None, *, alpha=0.8, gamma=2.0,
                      smooth=1e-6, is_boun=False, binary_targets=False):
    """Pallas implementation of SegmentationLoss.forward (NCHW inputs).

    binary_targets=False (default) reproduces the reference exp(-bce) focal
    weighting exactly (soft-label safe); set True as an opt-in EUP optimization
    when y_true is guaranteed to be a hard 0/1 mask (identical result there).
    bf16 inputs are supported (upcast in-kernel) and halve HBM traffic.
    """
    del alpha  # stored but unused in the reference forward pass
    if is_boun and boundary is None:
        raise ValueError("boundary tensor is required when is_boun=True")
    main = _main_loss(y_pred, y_true, boundary, gamma=gamma, smooth=smooth,
                      is_boun=is_boun, binary_targets=binary_targets)
    if not is_boun:
        return main
    return main + 0.1 * _boundary_align_loss(y_pred, y_true)


# ---------------------------------------------------------------------------
# Pure-JAX reference (mirrors the PyTorch module) + self-test
# ---------------------------------------------------------------------------
def _reference(y_pred, y_true, boundary, *, gamma=2.0, smooth=1e-6, is_boun=False):
    yp = jax.nn.sigmoid(y_pred)
    inter = jnp.sum(yp * y_true, axis=(1, 2, 3))
    union = jnp.sum(yp, axis=(1, 2, 3)) + jnp.sum(y_true, axis=(1, 2, 3))
    dice = (2.0 * inter + smooth) / (union + smooth)
    dice_loss = 1.0 - jnp.mean(dice)
    bce = -(y_true * jnp.maximum(jnp.log(yp), -100.0)
            + (1.0 - y_true) * jnp.maximum(jnp.log(1.0 - yp), -100.0))
    pt = jnp.exp(-bce)
    focal = (1.0 - pt) ** gamma * bce
    if not is_boun:
        return 0.5 * dice_loss + 0.5 * jnp.mean(focal)

    focal = focal * (boundary * 0.1 + 1.0)

    def dist_transform(x):
        xb = (x > 0.5).astype(jnp.float32)
        H, W = x.shape[2], x.shape[3]
        xp = jnp.pad(xb, ((0, 0), (0, 0), (1, 1), (1, 1)), constant_values=1.0)
        m = xp[:, :, 1:1 + H, 1:1 + W]
        for dh in range(3):
            for dw in range(3):
                m = jnp.minimum(m, xp[:, :, dh:dh + H, dw:dw + W])
        return m

    bl = jnp.mean(jnp.abs(dist_transform(yp) - dist_transform(y_true)))
    return 0.7 * dice_loss + 0.2 * jnp.mean(focal) + 0.1 * bl


if __name__ == "__main__":
    key = jax.random.PRNGKey(0)
    k1, k2, k3 = jax.random.split(key, 3)
    B, C, H, W = 2, 4, 16, 16

    y_pred = jax.random.normal(k1, (B, C, H, W), dtype=jnp.float32)
    y_true = jax.random.bernoulli(k2, 0.5, (B, C, H, W)).astype(jnp.float32)
    boundary = jax.random.bernoulli(k3, 0.2, (B, C, H, W)).astype(jnp.float32)

    # Default path (is_boun=False, exact focal) -- boundary tensor never DMA'd.
    loss = jax.block_until_ready(segmentation_loss(y_pred, y_true, boundary))
    ref = _reference(y_pred, y_true, boundary, is_boun=False)
    assert abs(float(loss) - float(ref)) < 2e-3, (float(loss), float(ref))

    # Opt-in binary-mask focal formulation (identical for hard 0/1 targets).
    loss_bin = jax.block_until_ready(
        segmentation_loss(y_pred, y_true, boundary, binary_targets=True))
    assert abs(float(loss_bin) - float(ref)) < 2e-3, (float(loss_bin), float(ref))

    # Boundary-aware path (is_boun=True).
    loss_b = jax.block_until_ready(
        segmentation_loss(y_pred, y_true, boundary, is_boun=True))
    ref_b = _reference(y_pred, y_true, boundary, is_boun=True)
    assert abs(float(loss_b) - float(ref_b)) < 2e-3, (float(loss_b), float(ref_b))

    print("KERNEL_OK")
</pallas_src>

<mosaic_0001>
module attributes {stable_mosaic.version = 11 : i64} {
  func.func @kernel(%arg0: i32, %arg1: i32, %arg2: memref<8x256xf32, #tpu.memory_space<vmem>>, %arg3: memref<8x256xf32, #tpu.memory_space<vmem>>, %arg4: memref<1x8x128xf32, #tpu.memory_space<vmem>>, %arg5: memref<1x8x128xf32, #tpu.memory_space<vmem>>, %arg6: memref<1x8x128xf32, #tpu.memory_space<vmem>>, %arg7: memref<8x256xf32, #tpu.memory_space<vmem>>, %arg8: memref<8x256xf32, #tpu.memory_space<vmem>>, %arg9: memref<8x256xf32, #tpu.memory_space<vmem>>) attributes {dimension_semantics = [#tpu.dimension_semantics<parallel>, #tpu.dimension_semantics<arbitrary>], iteration_bounds = array<i64: 1, 1>, scalar_prefetch = 0 : i64, scratch_operands = 3 : i64, tpu.core_type = #tpu.core_type<tc>, window_params = [{transform_indices = @transform_0, window_bounds = array<i64: 8, 256>}, {transform_indices = @transform_1, window_bounds = array<i64: 8, 256>}, {transform_indices = @transform_2, window_bounds = array<i64: 1, 8, 128>}, {transform_indices = @transform_3, window_bounds = array<i64: 1, 8, 128>}, {transform_indices = @transform_4, window_bounds = array<i64: 1, 8, 128>}]} {
    %c0_i32 = arith.constant 0 : i32
    %0 = arith.cmpi eq, %arg1, %c0_i32 : i32
    %1 = arith.extui %0 : i1 to i32
    %c0_i32_0 = arith.constant 0 : i32
    %2 = arith.cmpi ne, %1, %c0_i32_0 : i32
    scf.if %2 {
      %cst_25 = arith.constant 0.000000e+00 : f32
      %46 = vector.broadcast %cst_25 : f32 to vector<8x256xf32>
      %c0_26 = arith.constant 0 : index
      %c0_27 = arith.constant 0 : index
      %47 = vector.load %arg7[%c0_26, %c0_27] : memref<8x256xf32, #tpu.memory_space<vmem>>, vector<8x256xf32>
      tpu.vector_store %arg7[%c0_26, %c0_27], %46 {strides = array<i32>} : memref<8x256xf32, #tpu.memory_space<vmem>>, vector<8x256xf32>,
      %cst_28 = arith.constant 0.000000e+00 : f32
      %48 = vector.broadcast %cst_28 : f32 to vector<8x256xf32>
      %c0_29 = arith.constant 0 : index
      %c0_30 = arith.constant 0 : index
      %49 = vector.load %arg8[%c0_29, %c0_30] : memref<8x256xf32, #tpu.memory_space<vmem>>, vector<8x256xf32>
      tpu.vector_store %arg8[%c0_29, %c0_30], %48 {strides = array<i32>} : memref<8x256xf32, #tpu.memory_space<vmem>>, vector<8x256xf32>,
      %cst_31 = arith.constant 0.000000e+00 : f32
      %50 = vector.broadcast %cst_31 : f32 to vector<8x256xf32>
      %c0_32 = arith.constant 0 : index
      %c0_33 = arith.constant 0 : index
      %51 = vector.load %arg9[%c0_32, %c0_33] : memref<8x256xf32, #tpu.memory_space<vmem>>, vector<8x256xf32>
      tpu.vector_store %arg9[%c0_32, %c0_33], %50 {strides = array<i32>} : memref<8x256xf32, #tpu.memory_space<vmem>>, vector<8x256xf32>,
    } else {
    }
    %c0 = arith.constant 0 : index
    %c0_1 = arith.constant 0 : index
    %3 = vector.load %arg2[%c0, %c0_1] : memref<8x256xf32, #tpu.memory_space<vmem>>, vector<8x256xf32>
    %c0_2 = arith.constant 0 : index
    %c0_3 = arith.constant 0 : index
    %4 = vector.load %arg3[%c0_2, %c0_3] : memref<8x256xf32, #tpu.memory_space<vmem>>, vector<8x256xf32>
    %5 = arith.negf %3 : vector<8x256xf32>
    %6 = math.exp %5 : vector<8x256xf32>
    %cst = arith.constant 1.000000e+00 : f32
    %7 = vector.broadcast %cst : f32 to vector<8x256xf32>
    %8 = arith.addf %7, %6 : vector<8x256xf32>
    %9 = arith.divf %7, %8 : vector<8x256xf32>
    %10 = arith.mulf %9, %4 : vector<8x256xf32>
    %11 = arith.addf %9, %4 : vector<8x256xf32>
    %12 = math.log %9 : vector<8x256xf32>
    %cst_4 = arith.constant -1.000000e+02 : f32
    %13 = vector.broadcast %cst_4 : f32 to vector<8x256xf32>
    %14 = arith.maximumf %12, %13 : vector<8x256xf32>
    %cst_5 = arith.constant 1.000000e+00 : f32
    %15 = vector.broadcast %cst_5 : f32 to vector<8x256xf32>
    %16 = arith.subf %15, %9 : vector<8x256xf32>
    %17 = math.log %16 : vector<8x256xf32>
    %cst_6 = arith.constant -1.000000e+02 : f32
    %18 = vector.broadcast %cst_6 : f32 to vector<8x256xf32>
    %19 = arith.maximumf %17, %18 : vector<8x256xf32>
    %20 = arith.mulf %4, %14 : vector<8x256xf32>
    %cst_7 = arith.constant 1.000000e+00 : f32
    %21 = vector.broadcast %cst_7 : f32 to vector<8x256xf32>
    %22 = arith.subf %21, %4 : vector<8x256xf32>
    %23 = arith.mulf %22, %19 : vector<8x256xf32>
    %24 = arith.addf %20, %23 : vector<8x256xf32>
    %cst_8 = arith.constant 0.000000e+00 : f32
    %25 = vector.broadcast %cst_8 : f32 to vector<8x256xf32>
    %26 = arith.subf %25, %24 : vector<8x256xf32>
    %cst_9 = arith.constant 0.000000e+00 : f32
    %27 = vector.broadcast %cst_9 : f32 to vector<8x256xf32>
    %28 = arith.subf %27, %26 : vector<8x256xf32>
    %29 = math.exp %28 : vector<8x256xf32>
    %cst_10 = arith.constant 1.000000e+00 : f32
    %30 = vector.broadcast %cst_10 : f32 to vector<8x256xf32>
    %31 = arith.subf %30, %29 : vector<8x256xf32>
    %32 = arith.mulf %31, %31 : vector<8x256xf32>
    %33 = arith.mulf %32, %26 : vector<8x256xf32>
    %c0_11 = arith.constant 0 : index
    %c0_12 = arith.constant 0 : index
    %34 = vector.load %arg7[%c0_11, %c0_12] : memref<8x256xf32, #tpu.memory_space<vmem>>, vector<8x256xf32>
    %35 = arith.addf %34, %10 : vector<8x256xf32>
    %c0_13 = arith.constant 0 : index
    %c0_14 = arith.constant 0 : index
    %36 = vector.load %arg7[%c0_13, %c0_14] : memref<8x256xf32, #tpu.memory_space<vmem>>, vector<8x256xf32>
    tpu.vector_store %arg7[%c0_13, %c0_14], %35 {strides = array<i32>} : memref<8x256xf32, #tpu.memory_space<vmem>>, vector<8x256xf32>,
    %c0_15 = arith.constant 0 : index
    %c0_16 = arith.constant 0 : index
    %37 = vector.load %arg8[%c0_15, %c0_16] : memref<8x256xf32, #tpu.memory_space<vmem>>, vector<8x256xf32>
    %38 = arith.addf %37, %11 : vector<8x256xf32>
    %c0_17 = arith.constant 0 : index
    %c0_18 = arith.constant 0 : index
    %39 = vector.load %arg8[%c0_17, %c0_18] : memref<8x256xf32, #tpu.memory_space<vmem>>, vector<8x256xf32>
    tpu.vector_store %arg8[%c0_17, %c0_18], %38 {strides = array<i32>} : memref<8x256xf32, #tpu.memory_space<vmem>>, vector<8x256xf32>,
    %c0_19 = arith.constant 0 : index
    %c0_20 = arith.constant 0 : index
    %40 = vector.load %arg9[%c0_19, %c0_20] : memref<8x256xf32, #tpu.memory_space<vmem>>, vector<8x256xf32>
    %41 = arith.addf %40, %33 : vector<8x256xf32>
    %c0_21 = arith.constant 0 : index
    %c0_22 = arith.constant 0 : index
    %42 = vector.load %arg9[%c0_21, %c0_22] : memref<8x256xf32, #tpu.memory_space<vmem>>, vector<8x256xf32>
    tpu.vector_store %arg9[%c0_21, %c0_22], %41 {strides = array<i32>} : memref<8x256xf32, #tpu.memory_space<vmem>>, vector<8x256xf32>,
    %c0_i32_23 = arith.constant 0 : i32
    %43 = arith.cmpi eq, %arg1, %c0_i32_23 : i32
    %44 = arith.extui %43 : i1 to i32
    %c0_i32_24 = arith.constant 0 : i32
    %45 = arith.cmpi ne, %44, %c0_i32_24 : i32
    scf.if %45 {
      %c0_25 = arith.constant 0 : index
      %c0_26 = arith.constant 0 : index
      %46 = vector.load %arg7[%c0_25, %c0_26] : memref<8x256xf32, #tpu.memory_space<vmem>>, vector<8x256xf32>
      %cst_27 = arith.constant dense<0.000000e+00> : vector<8xf32>
      %47 = vector.multi_reduction <add>, %46, %cst_27 [1] : vector<8x256xf32> to vector<8xf32>
      %48 = vector.shape_cast %47 : vector<8xf32> to vector<8x1xf32>
      %49 = vector.shape_cast %48 : vector<8x1xf32> to vector<1x8x1xf32>
      %50 = vector.shape_cast %49 : vector<1x8x1xf32> to vector<1x8x1xf32>
      %51 = vector.broadcast %50 : vector<1x8x1xf32> to vector<1x8x128xf32>
      %c0_28 = arith.constant 0 : index
      %c0_29 = arith.constant 0 : index
      %c0_30 = arith.constant 0 : index
      %52 = vector.load %arg4[%c0_28, %c0_29, %c0_30] : memref<1x8x128xf32, #tpu.memory_space<vmem>>, vector<1x8x128xf32>
      tpu.vector_store %arg4[%c0_28, %c0_29, %c0_30], %51 {strides = array<i32>} : memref<1x8x128xf32, #tpu.memory_space<vmem>>, vector<1x8x128xf32>,
      %c0_31 = arith.constant 0 : index
      %c0_32 = arith.constant 0 : index
      %53 = vector.load %arg8[%c0_31, %c0_32] : memref<8x256xf32, #tpu.memory_space<vmem>>, vector<8x256xf32>
      %cst_33 = arith.constant dense<0.000000e+00> : vector<8xf32>
      %54 = vector.multi_reduction <add>, %53, %cst_33 [1] : vector<8x256xf32> to vector<8xf32>
      %55 = vector.shape_cast %54 : vector<8xf32> to vector<8x1xf32>
      %56 = vector.shape_cast %55 : vector<8x1xf32> to vector<1x8x1xf32>
      %57 = vector.shape_cast %56 : vector<1x8x1xf32> to vector<1x8x1xf32>
      %58 = vector.broadcast %57 : vector<1x8x1xf32> to vector<1x8x128xf32>
      %c0_34 = arith.constant 0 : index
      %c0_35 = arith.constant 0 : index
      %c0_36 = arith.constant 0 : index
      %59 = vector.load %arg5[%c0_34, %c0_35, %c0_36] : memref<1x8x128xf32, #tpu.memory_space<vmem>>, vector<1x8x128xf32>
      tpu.vector_store %arg5[%c0_34, %c0_35, %c0_36], %58 {strides = array<i32>} : memref<1x8x128xf32, #tpu.memory_space<vmem>>, vector<1x8x128xf32>,
      %c0_37 = arith.constant 0 : index
      %c0_38 = arith.constant 0 : index
      %60 = vector.load %arg9[%c0_37, %c0_38] : memref<8x256xf32, #tpu.memory_space<vmem>>, vector<8x256xf32>
      %cst_39 = arith.constant dense<0.000000e+00> : vector<8xf32>
      %61 = vector.multi_reduction <add>, %60, %cst_39 [1] : vector<8x256xf32> to vector<8xf32>
      %62 = vector.shape_cast %61 : vector<8xf32> to vector<8x1xf32>
      %63 = vector.shape_cast %62 : vector<8x1xf32> to vector<1x8x1xf32>
      %64 = vector.shape_cast %63 : vector<1x8x1xf32> to vector<1x8x1xf32>
      %65 = vector.broadcast %64 : vector<1x8x1xf32> to vector<1x8x128xf32>
      %c0_40 = arith.constant 0 : index
      %c0_41 = arith.constant 0 : index
      %c0_42 = arith.constant 0 : index
      %66 = vector.load %arg6[%c0_40, %c0_41, %c0_42] : memref<1x8x128xf32, #tpu.memory_space<vmem>>, vector<1x8x128xf32>
      tpu.vector_store %arg6[%c0_40, %c0_41, %c0_42], %65 {strides = array<i32>} : memref<1x8x128xf32, #tpu.memory_space<vmem>>, vector<1x8x128xf32>,
    } else {
    }
    return
  }
  func.func @transform_0(%arg0: i32, %arg1: i32) -> (i32, i32) {
    %c1_i32 = arith.constant 1 : i32
    %0 = arith.muli %arg0, %c1_i32 : i32
    %1 = arith.addi %0, %arg1 : i32
    %c0_i32 = arith.constant 0 : i32
    %c0_i32_0 = arith.constant 0 : i32
    return %c0_i32, %1 : i32, i32
  }
  func.func @transform_1(%arg0: i32, %arg1: i32) -> (i32, i32) {
    %c1_i32 = arith.constant 1 : i32
    %0 = arith.muli %arg0, %c1_i32 : i32
    %1 = arith.addi %0, %arg1 : i32
    %c0_i32 = arith.constant 0 : i32
    %c0_i32_0 = arith.constant 0 : i32
    return %c0_i32, %1 : i32, i32
  }
  func.func @transform_2(%arg0: i32, %arg1: i32) -> (i32, i32, i32) {
    %c0_i32 = arith.constant 0 : i32
    %c0_i32_0 = arith.constant 0 : i32
    %c0_i32_1 = arith.constant 0 : i32
    return %arg0, %c0_i32, %c0_i32_0 : i32, i32, i32
  }
  func.func @transform_3(%arg0: i32, %arg1: i32) -> (i32, i32, i32) {
    %c0_i32 = arith.constant 0 : i32
    %c0_i32_0 = arith.constant 0 : i32
    %c0_i32_1 = arith.constant 0 : i32
    return %arg0, %c0_i32, %c0_i32_0 : i32, i32, i32
  }
  func.func @transform_4(%arg0: i32, %arg1: i32) -> (i32, i32, i32) {
    %c0_i32 = arith.constant 0 : i32
    %c0_i32_0 = arith.constant 0 : i32
    %c0_i32_1 = arith.constant 0 : i32
    return %arg0, %c0_i32, %c0_i32_0 : i32, i32, i32
  }
}

</mosaic_0001>

<bundles_post_ra>
// kernel: tpu_custom_call.1
= control target key start
LH: loop header
LB: loop body
LE: loop exit
PB: predicated region body
PF: predicated region fallthrough
CT: control target
= control target key end

     0   :  { %10 = vsyncpa [#allocation6], 0  ;;  %s435_s0 = inlined_call_operand.hbm [shape: f32[8,256], index: 0, kind: input, shape index: {}]   ;;  %s436_s1 = inlined_call_operand.hbm [shape: f32[8,256], index: 1, kind: input, shape index: {}]   ;;  %s437_s2 = inlined_call_operand.hbm [shape: f32[1,8,128], index: 2, kind: output, shape index: {0}]   ;;  %s438_s3 = inlined_call_operand.hbm [shape: f32[1,8,128], index: 3, kind: output, shape index: {1}]   ;;  %s439_s4 = inlined_call_operand.hbm [shape: f32[1,8,128], index: 4, kind: output, shape index: {2}]  }
   0x1   :  { %11 = vsyncpa [#allocation9], 0 }
   0x2   :  { %12 = vsyncpa [#allocation7], 0 }
   0x3   :  { %13 = vsyncpa [#allocation12], 0  ;;  %s345_s15 = smov [#allocation5]   ;;  %s346_s17 = smov [#allocation8]  }
   0x4   :  { %s24_s16 = sshll.u32 %s345_s15, 4  ;;  %s38_s18 = sshll.u32 %s346_s17, 4  ;;  %s25_s16 = int_to_ptr.vmem [resolvable:$true] %s24_s16  ;;  %s39_s18 = int_to_ptr.vmem [resolvable:$true] %s38_s18 }
   0x5   :  { %s227_s21 = scalar_lea.hbm %s435_s0, 256 }
   0x6   :  { %p228_p0 = scmp.ne.s32.totalorder %s435_s0, %s227_s21  ;;  %p231_p1 = scmp.lt.u32.totalorder %s227_s21, %s435_s0 }
   0x8   :  { %p233_p2 = pnand %p231_p1, %p228_p0 }
   0xa   :  { %236 = shalt.err (!%p233_p2)
}
   0xb   :  { %s237_s26 = scalar_lea.vmem %s25_s16, 256  ;;  %p242_p4 = scmp.lt.s32.totalorder %s25_s16, %s25_s16 }
   0xc   :  { %p238_p3 = scmp.ne.s32.totalorder %s25_s16, %s237_s26  ;;  %p243_p5 = scmp.lt.s32.totalorder %s237_s26, %s237_s26 }
   0xe   :  { %p244_p6 = por %p243_p5, %p242_p4 }
  0x10   :  { %p245_p7 = pnand %p244_p6, %p238_p3 }
  0x12   :  { %248 = shalt.err (!%p245_p7)
}
  0x13   :  { %27 = dma.hbm_to_vmem [thread:$0]  %s435_s0, 256, %s25_s16, [#allocation6]  }
  0x14   :  { %s249_s5 = scalar_lea.hbm %s436_s1, 256 }
  0x15   :  { %p250_p8 = scmp.ne.s32.totalorder %s436_s1, %s249_s5  ;;  %p253_p9 = scmp.lt.u32.totalorder %s249_s5, %s436_s1 }
  0x17   :  { %p255_p10 = pnand %p253_p9, %p250_p8 }
  0x19   :  { %258 = shalt.err (!%p255_p10)
}
  0x1a   :  { %s259_s10 = scalar_lea.vmem %s39_s18, 256  ;;  %p264_p12 = scmp.lt.s32.totalorder %s39_s18, %s39_s18 }
  0x1b   :  { %p260_p11 = scmp.ne.s32.totalorder %s39_s18, %s259_s10  ;;  %p265_p13 = scmp.lt.s32.totalorder %s259_s10, %s259_s10 }
  0x1d   :  { %p266_p0 = por %p265_p13, %p264_p12 }
  0x1f   :  { %p267_p1 = pnand %p266_p0, %p260_p11 }
  0x21   :  { %270 = shalt.err (!%p267_p1)
}
  0x22   :  { %41 = dma.hbm_to_vmem [thread:$0]  %s436_s1, 256, %s39_s18, [#allocation9]  }
  0x23   :  { %337 = dma.done.wait [#allocation6], 256  }
  0x24   :  { %338 = vsyncadd [#allocation6], 4294967040 }
  0x25   :  { %339 = dma.done.wait [#allocation9], 256  }
  0x26   :  { %340 = vsyncadd [#allocation9], 4294967040  ;;  %v62_v0 = vld [vmem:[#allocation5] sm:$0xff]  ;;  %v63_v1 = vld [vmem:[#allocation5 + $0x8] sm:$0xff]  ;;  %s347_s1 = smov [#allocation11]   ;;  %s348_s13 = smov [#allocation10]  }
  0x27   :  { %v200_v2 = vmul.f32 -1.442695, %v62_v0  ;;  %v201_v3 = vmul.f32 -1.442695, %v63_v1  ;;  %v64_v9 = vld [vmem:[#allocation8] sm:$0xff]  ;;  %v65_v11 = vld [vmem:[#allocation8 + $0x8] sm:$0xff] }
  0x28   :  { %v98_v28 = vsub.f32 1.0, %v64_v9  ;;  %v99_v31 = vsub.f32 1.0, %v65_v11  ;;  %s173_s12 = sshll.u32 %s347_s1, 4  ;;  %s163_s14 = sshll.u32 %s348_s13, 4  ;;  %s174_s12 = int_to_ptr.vmem [resolvable:$true] %s173_s12  ;;  %s164_s14 = int_to_ptr.vmem [resolvable:$true] %s163_s14 }
  0x29   :  { %207 = vpow2.f32 %v200_v2  ;;  %s271_s15 = scalar_lea.vmem %s174_s12, 128  ;;  %p276_p3 = scmp.lt.s32.totalorder %s174_s12, %s174_s12 }
  0x2a   :  { %209 = vpow2.f32 %v201_v3  ;;  %p272_p2 = scmp.ne.s32.totalorder %s174_s12, %s271_s15  ;;  %p277_p4 = scmp.lt.s32.totalorder %s271_s15, %s271_s15 }
  0x2c   :  { %p278_p5 = por %p277_p4, %p276_p3 }
  0x2e   :  { %p279_p6 = pnand %p278_p5, %p272_p2 }
  0x33   :  { %v208_v4 = vpop.eup %207 }
  0x34   :  { %v210_v5 = vpop.eup %209  ;;  %v72_v6 = vadd.f32 1.0, %v208_v4 }
  0x35   :  { %v73_v7 = vadd.f32 1.0, %v210_v5 }
  0x36   :  { %211 = vrcp.f32 %v72_v6 }
  0x37   :  { %213 = vrcp.f32 %v73_v7 }
  0x40   :  { %v212_v8 = vpop.eup %211 }
  0x41   :  { %v214_v10 = vpop.eup %213  ;;  %v80_v12 = vadd.f32 %v212_v8, %v64_v9  ;;  %215 = vlog2.f32 %v212_v8  ;;  %v88_v13 = vsub.f32 1.0, %v212_v8  ;;  %v78_v14 = vmul.f32 %v212_v8, %v64_v9 }
  0x42   :  { %v81_v15 = vadd.f32 %v214_v10, %v65_v11  ;;  %217 = vlog2.f32 %v214_v10  ;;  %v89_v16 = vsub.f32 1.0, %v214_v10  ;;  %v79_v17 = vmul.f32 %v214_v10, %v65_v11 }
  0x43   :  { %219 = vlog2.f32 %v88_v13 }
  0x44   :  { %v147_v18 = vadd.f32 %v81_v15, %v80_v12  ;;  %221 = vlog2.f32 %v89_v16  ;;  %v141_v19 = vadd.f32 %v79_v17, %v78_v14 }
  0x46   :  { %148 = vadd.xlane.f32.xlu0 %v147_v18 }
  0x4a   :  { %142 = vadd.xlane.f32.xlu0 %v141_v19 }
  0x4b   :  { %v216_v20 = vpop.eup %215 }
  0x4c   :  { %v218_v21 = vpop.eup %217  ;;  %v83_v22 = vmul.f32 0.6931472, %v216_v20 }
  0x4d   :  { %v220_v23 = vpop.eup %219  ;;  %v85_v24 = vmul.f32 0.6931472, %v218_v21 }
  0x4e   :  { %v222_v25 = vpop.eup %221  ;;  %v86_v26 = vmax.f32 %v83_v22, -100.0  ;;  %v91_v27 = vmul.f32 0.6931472, %v220_v23 }
  0x4f   :  { %v87_v29 = vmax.f32 %v85_v24, -100.0  ;;  %v93_v30 = vmul.f32 0.6931472, %v222_v25 }
  0x50   :  { %v94_v32 = vmax.f32 %v91_v27, -100.0  ;;  %v96_v33 = vmul.f32 %v86_v26, %v64_v9 }
  0x51   :  { %v95_v34 = vmax.f32 %v93_v30, -100.0  ;;  %v97_v35 = vmul.f32 %v87_v29, %v65_v11 }
  0x52   :  { %v100_v36 = vmul.f32 %v98_v28, %v94_v32 }
  0x53   :  { %v101_v37 = vmul.f32 %v99_v31, %v95_v34 }
  0x54   :  { %v102_v38 = vadd.f32 %v100_v36, %v96_v33 }
  0x55   :  { %v103_v39 = vadd.f32 %v101_v37, %v97_v35 }
  0x56   :  { %v104_v40 = vsub.f32 0.0, %v102_v38 }
  0x57   :  { %v105_v41 = vsub.f32 0.0, %v103_v39 }
  0x58   :  { %v106_v42 = vsub.f32 0.0, %v104_v40 }
  0x59   :  { %v107_v43 = vsub.f32 0.0, %v105_v41 }
  0x5a   :  { %v108_v44 = vmul.f32 1.442695, %v106_v42 }
  0x5b   :  { %v110_v45 = vmul.f32 1.442695, %v107_v43 }
  0x5c   :  { %223 = vpow2.f32 %v108_v44 }
  0x5d   :  { %225 = vpow2.f32 %v110_v45 }
  0x66   :  { %v224_v46 = vpop.eup %223 }
  0x67   :  { %v226_v47 = vpop.eup %225  ;;  %v112_v48 = vsub.f32 1.0, %v224_v46 }
  0x68   :  { %v113_v49 = vsub.f32 1.0, %v226_v47 }
  0x69   :  { %v114_v50 = vmul.f32 %v112_v48, %v112_v48 }
  0x6a   :  { %v115_v51 = vmul.f32 %v113_v49, %v113_v49 }
  0x6b   :  { %v116_v52 = vmul.f32 %v114_v50, %v104_v40 }
  0x6c   :  { %v117_v53 = vmul.f32 %v115_v51, %v105_v41 }
  0x6e   :  { %v153_v54 = vadd.f32 %v117_v53, %v116_v52 }
  0x70   :  { %154 = vadd.xlane.f32.xlu1 %v153_v54 }
  0xd3   :  { %v149_v55 = vpop.xlane.xlu0 %148 }
  0xd4   :  { %150 = vst [vmem:[#allocation11] sm:$0xff] %v149_v55 }
  0xd5   :  { %282 = shalt.err (!%p279_p6)
}
  0xd6   :  { %s283_s18 = scalar_lea.hbm %s438_s3, 128 }
  0xd7   :  { %p284_p7 = scmp.ne.s32.totalorder %s438_s3, %s283_s18  ;;  %p287_p8 = scmp.lt.u32.totalorder %s283_s18, %s438_s3 }
  0xd9   :  { %p289_p9 = pnand %p287_p8, %p284_p7 }
  0xdb   :  { %292 = shalt.err (!%p289_p9)
}
  0xdc   :  { %176 = dma.vmem_to_hbm [thread:$0]  %s174_s12, 128, %s438_s3, [#allocation12]   ;;  %v143_v56 = vpop.xlane.xlu0 %142 }
  0xdd   :  { %144 = vst [vmem:[#allocation10] sm:$0xff] %v143_v56  ;;  %s293_s25 = scalar_lea.vmem %s164_s14, 128  ;;  %p298_p11 = scmp.lt.s32.totalorder %s164_s14, %s164_s14 }
  0xde   :  { %p294_p10 = scmp.ne.s32.totalorder %s164_s14, %s293_s25  ;;  %p299_p12 = scmp.lt.s32.totalorder %s293_s25, %s293_s25 }
  0xe0   :  { %p300_p13 = por %p299_p12, %p298_p11 }
  0xe2   :  { %p301_p0 = pnand %p300_p13, %p294_p10 }
  0xe4   :  { %304 = shalt.err (!%p301_p0)
}
  0xe5   :  { %s305_s28 = scalar_lea.hbm %s437_s2, 128 }
  0xe6   :  { %p306_p1 = scmp.ne.s32.totalorder %s437_s2, %s305_s28  ;;  %p309_p2 = scmp.lt.u32.totalorder %s305_s28, %s437_s2 }
  0xe8   :  { %p311_p3 = pnand %p309_p2, %p306_p1 }
  0xea   :  { %314 = shalt.err (!%p311_p3)
}
  0xeb   :  { %166 = dma.vmem_to_hbm [thread:$0]  %s164_s14, 128, %s437_s2, [#allocation7]  }
  0xec   :  { %s349_s8 = smov [#allocation13]  }
  0xed   :  { %s183_s9 = sshll.u32 %s349_s8, 4  ;;  %s184_s9 = int_to_ptr.vmem [resolvable:$true] %s183_s9 }
  0xee   :  { %s315_s10 = scalar_lea.vmem %s184_s9, 128  ;;  %p320_p5 = scmp.lt.s32.totalorder %s184_s9, %s184_s9 }
  0xef   :  { %p316_p4 = scmp.ne.s32.totalorder %s184_s9, %s315_s10  ;;  %p321_p6 = scmp.lt.s32.totalorder %s315_s10, %s315_s10 }
  0xf1   :  { %p322_p7 = por %p321_p6, %p320_p5 }
  0xf3   :  { %p323_p8 = pnand %p322_p7, %p316_p4 }
  0xfd   :  { %v155_v57 = vpop.xlane.xlu1 %154 }
  0xfe   :  { %156 = vst [vmem:[#allocation13] sm:$0xff] %v155_v57 }
  0xff   :  { %326 = shalt.err (!%p323_p8)
}
 0x100   :  { %s327_s1 = scalar_lea.hbm %s439_s4, 128 }
 0x101   :  { %p328_p9 = scmp.ne.s32.totalorder %s439_s4, %s327_s1  ;;  %p331_p10 = scmp.lt.u32.totalorder %s327_s1, %s439_s4 }
 0x103   :  { %p333_p11 = pnand %p331_p10, %p328_p9 }
 0x105   :  { %336 = shalt.err (!%p333_p11)
}
 0x106   :  { %186 = dma.vmem_to_hbm [thread:$0]  %s184_s9, 128, %s439_s4, [#allocation12]  }
 0x107   :  { %341 = dma.done.wait [#allocation7], 128  }
 0x108   :  { %342 = vsyncadd [#allocation7], 4294967168 }
 0x109   :  { %343 = dma.done.wait [#allocation12], 256  }
 0x10a   :  { %344 = vsyncadd [#allocation12], 4294967040 }
 0x10b   :  { %196 = vsyncpa [#allocation6], 1 }
 0x10c   :  { %197 = vsyncpa [#allocation9], 1 }
 0x10d   :  { %198 = vsyncpa [#allocation7], 1 }
 0x10e   :  { %199 = vsyncpa [#allocation12], 1 }

</bundles_post_ra>
